<compile_context>
chip_gen: v7x
topology: tpu7x:2x2x1
jax: 0.10.0
libtpu: 0.0.40
codegen_flags: <defaults>
</compile_context>

<pallas_src>
import functools

import jax
import jax.numpy as jnp
from jax.experimental import pallas as pl
from jax.experimental.pallas import tpu as pltpu


def _round_up(x, m):
    return (x + m - 1) // m * m


def _compiler_params(semantics):
    # Generation-aware scoped-VMEM budget with headroom (v5e/v6e: 128 MiB
    # physical -> 96 MiB; v7x: 64 MiB physical -> 48 MiB).
    try:
        cap = pltpu.get_tpu_info().vmem_capacity_bytes
        limit = min(int(cap * 3 // 4), 96 * 1024 * 1024)
    except Exception:  # pragma: no cover - conservative fallback
        limit = 48 * 1024 * 1024
    return pltpu.CompilerParams(dimension_semantics=semantics,
                                vmem_limit_bytes=limit)


def gru_layer_kernel(a_ref, x_ref, wih_ref, whh_ref, bih_ref, bhh_ref, o_ref,
                     *, tm, hp):
    """One GGNN layer for one destination-node tile.

    a_ref:  [TM, NP] bf16 adjacency row tile (A[dst, src] = edge multiplicity)
    x_ref:  [NP, HP] f32 full node state (block index constant across grid)
    wih/whh: [HP, 3*HP] bf16 packed gate weights (columns r|z|n, lane-aligned)
    bih/bhh: [1, 3*HP]  f32 packed gate biases
    o_ref:  [TM, HP] f32 new node state for this tile
    """
    row0 = pl.multiple_of(pl.program_id(0) * tm, tm)
    x_full_bf = x_ref[...].astype(jnp.bfloat16)                      # [NP, HP]
    x_tile = x_ref[pl.ds(row0, tm), :]                               # [TM, HP] f32

    # 'add' aggregation over incoming edges: one MXU matmul, f32 accumulation.
    xn = jnp.dot(a_ref[...], x_full_bf,
                 preferred_element_type=jnp.float32)                 # [TM, HP]

    # Fused GRU gates: exactly two [TM,HP]x[HP,3HP] matmuls per layer.
    gi = jnp.dot(xn.astype(jnp.bfloat16), wih_ref[...],
                 preferred_element_type=jnp.float32) + bih_ref[...]  # [TM, 3HP]
    gh = jnp.dot(x_tile.astype(jnp.bfloat16), whh_ref[...],
                 preferred_element_type=jnp.float32) + bhh_ref[...]  # [TM, 3HP]

    r = jax.nn.sigmoid(gi[:, :hp] + gh[:, :hp])
    z = jax.nn.sigmoid(gi[:, hp:2 * hp] + gh[:, hp:2 * hp])
    n = jnp.tanh(gi[:, 2 * hp:] + r * gh[:, 2 * hp:])
    o_ref[...] = (1.0 - z) * n + z * x_tile                          # f32 VPU


def dense_pool_kernel(x_ref, wd_ref, bd_ref, batch_ref, o_ref, *, num_graphs):
    """Dense layer + global_max_pool, running max over node tiles.

    x_ref:     [TM, HP] f32 node state tile
    wd_ref:    [HP, HP] bf16 pre-transposed dense weight
    bd_ref:    [1, HP]  f32 dense bias
    batch_ref: [TM, 1]  int32 graph id per node (-1 for padded nodes)
    o_ref:     [G, HP]  f32 pooled output (accumulator across the grid)
    """
    # TODO(synk): nn.Dropout is stochastic; implemented as eval-mode identity.
    y = jnp.dot(x_ref[...].astype(jnp.bfloat16), wd_ref[...],
                preferred_element_type=jnp.float32) + bd_ref[...]     # [TM, HP]

    b = batch_ref[...]                                                # [TM, 1]
    tm = b.shape[0]
    gids = jax.lax.broadcasted_iota(jnp.int32, (num_graphs, tm, 1), 0)
    mask = b[None, :, :] == gids                                      # [G, TM, 1]
    neg_inf = jnp.float32(-jnp.inf)
    tile_max = jnp.max(jnp.where(mask, y[None, :, :], neg_inf), axis=1)  # [G, HP]

    @pl.when(pl.program_id(0) == 0)
    def _():
        # Note: a graph id with no nodes produces a -inf row (matches reference).
        o_ref[...] = jnp.full_like(o_ref, neg_inf)

    o_ref[...] = jnp.maximum(o_ref[...], tile_max)


def ggnn_forward(x, edge_index, batch, params, num_graphs):
    N, H = x.shape
    L = len(params["w_ih"])
    G = num_graphs

    # Lane-align the hidden dimension; pick a dst-node tile (>=256 rows fills
    # the v6e/v7x 256x256 MXU; small problems run as one full tile).
    HP = _round_up(H, 128)
    if N <= 256:
        NP = _round_up(N, 8)
        TM = NP
    else:
        TM = 256
        NP = _round_up(N, TM)

    # --- wrapper-side glue -------------------------------------------------
    # Dense adjacency, built directly in bf16 (edge counts are exact in bf16).
    # TODO(synk): for realistic sparse graphs at large N, replace the dense
    # A @ x with block-sparse aggregation (scalar-prefetched per-block nonzero
    # mask + pl.when skip); dense is only sensible for small/dense graphs.
    src, dst = edge_index[0], edge_index[1]
    A = (jnp.zeros((NP, NP), jnp.bfloat16)
         .at[dst, src].add(jnp.bfloat16(1.0)))

    # Zero-padded node state; padded nodes never contribute (no edges, and
    # their batch id of -1 excludes them from pooling).
    x_p = jnp.zeros((NP, HP), jnp.float32).at[:N, :H].set(x)
    batch_p = (jnp.full((NP, 1), -1, jnp.int32)
               .at[:N, 0].set(batch.astype(jnp.int32)))

    # Pack GRU weights per layer: [HP, 3*HP], columns r|z|n each HP lanes wide
    # (zero padding keeps padded hidden lanes at exactly zero through layers).
    def pack_w(w):  # torch layout [3H, H] (row blocks r|z|n)
        wp = jnp.zeros((HP, 3 * HP), jnp.float32)
        for g in range(3):
            wp = wp.at[:H, g * HP:g * HP + H].set(w[g * H:(g + 1) * H, :].T)
        return wp.astype(jnp.bfloat16)

    def pack_b(b):  # [3H]
        bp = jnp.zeros((1, 3 * HP), jnp.float32)
        for g in range(3):
            bp = bp.at[0, g * HP:g * HP + H].set(b[g * H:(g + 1) * H])
        return bp

    wih = [pack_w(w) for w in params["w_ih"]]
    whh = [pack_w(w) for w in params["w_hh"]]
    bih = [pack_b(b) for b in params["b_ih"]]
    bhh = [pack_b(b) for b in params["b_hh"]]

    wd_p = (jnp.zeros((HP, HP), jnp.float32)
            .at[:H, :H].set(params["w_dense"].T).astype(jnp.bfloat16))
    bd_p = jnp.zeros((1, HP), jnp.float32).at[0, :H].set(params["b_dense"])

    # --- per-layer pallas_call: grid over destination-node tiles ------------
    full = lambda i: (0, 0)
    tiled = lambda i: (i, 0)
    layer_call = pl.pallas_call(
        functools.partial(gru_layer_kernel, tm=TM, hp=HP),
        out_shape=jax.ShapeDtypeStruct((NP, HP), jnp.float32),
        grid=(NP // TM,),
        in_specs=[
            pl.BlockSpec((TM, NP), tiled),          # A row tile
            pl.BlockSpec((NP, HP), full),           # full node state
            pl.BlockSpec((HP, 3 * HP), full),       # W_ih packed
            pl.BlockSpec((HP, 3 * HP), full),       # W_hh packed
            pl.BlockSpec((1, 3 * HP), full),        # b_ih packed
            pl.BlockSpec((1, 3 * HP), full),        # b_hh packed
        ],
        out_specs=pl.BlockSpec((TM, HP), tiled),
        compiler_params=_compiler_params(("parallel",)),
    )

    xs = x_p
    for l in range(L):
        xs = layer_call(A, xs, wih[l], whh[l], bih[l], bhh[l])

    # --- dense + global_max_pool: node-tile grid with running-max accumulator
    pooled = pl.pallas_call(
        functools.partial(dense_pool_kernel, num_graphs=G),
        out_shape=jax.ShapeDtypeStruct((G, HP), jnp.float32),
        grid=(NP // TM,),
        in_specs=[
            pl.BlockSpec((TM, HP), tiled),          # node state tile
            pl.BlockSpec((HP, HP), full),           # dense W^T
            pl.BlockSpec((1, HP), full),            # dense bias
            pl.BlockSpec((TM, 1), tiled),           # batch ids
        ],
        out_specs=pl.BlockSpec((G, HP), lambda i: (0, 0)),  # accumulator
        compiler_params=_compiler_params(("arbitrary",)),
    )(xs, wd_p, bd_p, batch_p)

    return pooled[:, :H]


def ggnn_reference(x, edge_index, batch, params, num_graphs):
    """Pure-JAX f32 reference mirroring the PyTorch forward (dropout in eval mode)."""
    N, H = x.shape
    src, dst = edge_index[0], edge_index[1]
    A = jnp.zeros((N, N), jnp.float32).at[dst, src].add(1.0)
    for wih, whh, bih, bhh in zip(params["w_ih"], params["w_hh"],
                                  params["b_ih"], params["b_hh"]):
        xn = A @ x
        gi = xn @ wih.T + bih
        gh = x @ whh.T + bhh
        r = jax.nn.sigmoid(gi[:, :H] + gh[:, :H])
        z = jax.nn.sigmoid(gi[:, H:2 * H] + gh[:, H:2 * H])
        n = jnp.tanh(gi[:, 2 * H:] + r * gh[:, 2 * H:])
        x = (1.0 - z) * n + z * x
    y = x @ params["w_dense"].T + params["b_dense"]
    mask = (batch[:, None] == jnp.arange(num_graphs)[None, :])
    masked = jnp.where(mask.T[:, :, None], y[None, :, :], -jnp.inf)
    return jnp.max(masked, axis=1)


def init_params(key, hidden, layer_num):
    k = 1.0 / jnp.sqrt(hidden)
    params = {"w_ih": [], "w_hh": [], "b_ih": [], "b_hh": []}
    for _ in range(layer_num):
        key, k1, k2, k3, k4 = jax.random.split(key, 5)
        params["w_ih"].append(jax.random.uniform(k1, (3 * hidden, hidden),
                                                 jnp.float32, -k, k))
        params["w_hh"].append(jax.random.uniform(k2, (3 * hidden, hidden),
                                                 jnp.float32, -k, k))
        params["b_ih"].append(jax.random.uniform(k3, (3 * hidden,),
                                                 jnp.float32, -k, k))
        params["b_hh"].append(jax.random.uniform(k4, (3 * hidden,),
                                                 jnp.float32, -k, k))
    key, k5, k6 = jax.random.split(key, 3)
    params["w_dense"] = jax.random.uniform(k5, (hidden, hidden), jnp.float32, -k, k)
    params["b_dense"] = jax.random.uniform(k6, (hidden,), jnp.float32, -k, k)
    return params


if __name__ == "__main__":
    hidden = 32
    layer_num = 2
    nodes_per_graph = 8
    num_graphs = 2
    N = nodes_per_graph * num_graphs

    key = jax.random.PRNGKey(0)
    key, kx = jax.random.split(key)
    x = jax.random.normal(kx, (N, hidden), jnp.float32)

    # Two ring graphs (bidirectional edges), batch assignment per node.
    srcs, dsts = [], []
    for g in range(num_graphs):
        base = g * nodes_per_graph
        for i in range(nodes_per_graph):
            a = base + i
            b = base + (i + 1) % nodes_per_graph
            srcs += [a, b]
            dsts += [b, a]
    edge_index = jnp.array([srcs, dsts], dtype=jnp.int32)       # [2, E], E = 32
    batch = jnp.repeat(jnp.arange(num_graphs, dtype=jnp.int32), nodes_per_graph)

    params = init_params(key, hidden, layer_num)

    out = ggnn_forward(x, edge_index, batch, params, num_graphs)
    out = jax.block_until_ready(out)

    ref = ggnn_reference(x, edge_index, batch, params, num_graphs)
    assert out.shape == (num_graphs, hidden)
    assert jnp.allclose(out, ref, rtol=1e-2, atol=1e-2), "mismatch vs JAX reference"

    print("KERNEL_OK")
</pallas_src>

<mosaic_0001>
module attributes {stable_mosaic.version = 11 : i64} {
  func.func @gru_layer_kernel(%arg0: i32, %arg1: memref<16x16xbf16, #tpu.memory_space<vmem>>, %arg2: memref<16x128xf32, #tpu.memory_space<vmem>>, %arg3: memref<128x384xbf16, #tpu.memory_space<vmem>>, %arg4: memref<128x384xbf16, #tpu.memory_space<vmem>>, %arg5: memref<1x384xf32, #tpu.memory_space<vmem>>, %arg6: memref<1x384xf32, #tpu.memory_space<vmem>>, %arg7: memref<16x128xf32, #tpu.memory_space<vmem>>) attributes {dimension_semantics = [#tpu.dimension_semantics<parallel>], iteration_bounds = array<i64: 1>, scalar_prefetch = 0 : i64, scratch_operands = 0 : i64, tpu.core_type = #tpu.core_type<tc>, window_params = [{transform_indices = @transform_0, window_bounds = array<i64: 16, 16>}, {pipeline_mode = #tpu.pipeline_mode<synchronous>, transform_indices = @transform_1, window_bounds = array<i64: 16, 128>}, {pipeline_mode = #tpu.pipeline_mode<synchronous>, transform_indices = @transform_2, window_bounds = array<i64: 128, 384>}, {pipeline_mode = #tpu.pipeline_mode<synchronous>, transform_indices = @transform_3, window_bounds = array<i64: 128, 384>}, {pipeline_mode = #tpu.pipeline_mode<synchronous>, transform_indices = @transform_4, window_bounds = array<i64: 1, 384>}, {pipeline_mode = #tpu.pipeline_mode<synchronous>, transform_indices = @transform_5, window_bounds = array<i64: 1, 384>}, {transform_indices = @transform_6, window_bounds = array<i64: 16, 128>}]} {
    %c16_i32 = arith.constant 16 : i32
    %0 = arith.muli %arg0, %c16_i32 : i32
    %1 = tpu.assume_multiple %0, 16 : i32
    %c0 = arith.constant 0 : index
    %c0_0 = arith.constant 0 : index
    %2 = vector.load %arg2[%c0, %c0_0] : memref<16x128xf32, #tpu.memory_space<vmem>>, vector<16x128xf32>
    %3 = arith.truncf %2 : vector<16x128xf32> to vector<16x128xbf16>
    %4 = arith.index_cast %1 : i32 to index
    %c0_1 = arith.constant 0 : index
    %5 = vector.load %arg2[%4, %c0_1] : memref<16x128xf32, #tpu.memory_space<vmem>>, vector<16x128xf32>
    %c0_2 = arith.constant 0 : index
    %c0_3 = arith.constant 0 : index
    %6 = vector.load %arg1[%c0_2, %c0_3] : memref<16x16xbf16, #tpu.memory_space<vmem>>, vector<16x16xbf16>
    %cst = arith.constant dense<0.000000e+00> : vector<16x128xf32>
    %7 = tpu.matmul %6, %3, %cst {dimension_numbers = #tpu.dot_dimension_numbers<[1], [0], [0], [1], [0, 0, 1, 1], [], []>} : vector<16x16xbf16>, vector<16x128xbf16>, vector<16x128xf32> -> vector<16x128xf32>
    %8 = arith.truncf %7 : vector<16x128xf32> to vector<16x128xbf16>
    %c0_4 = arith.constant 0 : index
    %c0_5 = arith.constant 0 : index
    %9 = vector.load %arg3[%c0_4, %c0_5] : memref<128x384xbf16, #tpu.memory_space<vmem>>, vector<128x384xbf16>
    %cst_6 = arith.constant dense<0.000000e+00> : vector<16x384xf32>
    %10 = tpu.matmul %8, %9, %cst_6 {dimension_numbers = #tpu.dot_dimension_numbers<[1], [0], [0], [1], [0, 0, 1, 1], [], []>} : vector<16x128xbf16>, vector<128x384xbf16>, vector<16x384xf32> -> vector<16x384xf32>
    %c0_7 = arith.constant 0 : index
    %c0_8 = arith.constant 0 : index
    %11 = vector.load %arg5[%c0_7, %c0_8] : memref<1x384xf32, #tpu.memory_space<vmem>>, vector<1x384xf32>
    %12 = vector.broadcast %11 : vector<1x384xf32> to vector<16x384xf32>
    %13 = arith.addf %10, %12 : vector<16x384xf32>
    %14 = arith.truncf %5 : vector<16x128xf32> to vector<16x128xbf16>
    %c0_9 = arith.constant 0 : index
    %c0_10 = arith.constant 0 : index
    %15 = vector.load %arg4[%c0_9, %c0_10] : memref<128x384xbf16, #tpu.memory_space<vmem>>, vector<128x384xbf16>
    %cst_11 = arith.constant dense<0.000000e+00> : vector<16x384xf32>
    %16 = tpu.matmul %14, %15, %cst_11 {dimension_numbers = #tpu.dot_dimension_numbers<[1], [0], [0], [1], [0, 0, 1, 1], [], []>} : vector<16x128xbf16>, vector<128x384xbf16>, vector<16x384xf32> -> vector<16x384xf32>
    %c0_12 = arith.constant 0 : index
    %c0_13 = arith.constant 0 : index
    %17 = vector.load %arg6[%c0_12, %c0_13] : memref<1x384xf32, #tpu.memory_space<vmem>>, vector<1x384xf32>
    %18 = vector.broadcast %17 : vector<1x384xf32> to vector<16x384xf32>
    %19 = arith.addf %16, %18 : vector<16x384xf32>
    %20 = vector.extract_strided_slice %13 {offsets = [0, 0], sizes = [16, 128], strides = [1, 1]} : vector<16x384xf32> to vector<16x128xf32>
    %21 = vector.extract_strided_slice %19 {offsets = [0, 0], sizes = [16, 128], strides = [1, 1]} : vector<16x384xf32> to vector<16x128xf32>
    %22 = arith.addf %20, %21 : vector<16x128xf32>
    %23 = arith.negf %22 : vector<16x128xf32>
    %24 = math.exp %23 : vector<16x128xf32>
    %cst_14 = arith.constant 1.000000e+00 : f32
    %25 = vector.broadcast %cst_14 : f32 to vector<16x128xf32>
    %26 = arith.addf %25, %24 : vector<16x128xf32>
    %27 = arith.divf %25, %26 : vector<16x128xf32>
    %28 = vector.extract_strided_slice %13 {offsets = [0, 128], sizes = [16, 128], strides = [1, 1]} : vector<16x384xf32> to vector<16x128xf32>
    %29 = vector.extract_strided_slice %19 {offsets = [0, 128], sizes = [16, 128], strides = [1, 1]} : vector<16x384xf32> to vector<16x128xf32>
    %30 = arith.addf %28, %29 : vector<16x128xf32>
    %31 = arith.negf %30 : vector<16x128xf32>
    %32 = math.exp %31 : vector<16x128xf32>
    %cst_15 = arith.constant 1.000000e+00 : f32
    %33 = vector.broadcast %cst_15 : f32 to vector<16x128xf32>
    %34 = arith.addf %33, %32 : vector<16x128xf32>
    %35 = arith.divf %33, %34 : vector<16x128xf32>
    %36 = vector.extract_strided_slice %13 {offsets = [0, 256], sizes = [16, 128], strides = [1, 1]} : vector<16x384xf32> to vector<16x128xf32>
    %37 = vector.extract_strided_slice %19 {offsets = [0, 256], sizes = [16, 128], strides = [1, 1]} : vector<16x384xf32> to vector<16x128xf32>
    %38 = arith.mulf %27, %37 : vector<16x128xf32>
    %39 = arith.addf %36, %38 : vector<16x128xf32>
    %40 = math.tanh %39 : vector<16x128xf32>
    %cst_16 = arith.constant 1.000000e+00 : f32
    %41 = vector.broadcast %cst_16 : f32 to vector<16x128xf32>
    %42 = arith.subf %41, %35 : vector<16x128xf32>
    %43 = arith.mulf %42, %40 : vector<16x128xf32>
    %44 = arith.mulf %35, %5 : vector<16x128xf32>
    %45 = arith.addf %43, %44 : vector<16x128xf32>
    %c0_17 = arith.constant 0 : index
    %c0_18 = arith.constant 0 : index
    %46 = vector.load %arg7[%c0_17, %c0_18] : memref<16x128xf32, #tpu.memory_space<vmem>>, vector<16x128xf32>
    tpu.vector_store %arg7[%c0_17, %c0_18], %45 {strides = array<i32>} : memref<16x128xf32, #tpu.memory_space<vmem>>, vector<16x128xf32>,
    return
  }
  func.func @transform_0(%arg0: i32) -> (i32, i32) {
    %c0_i32 = arith.constant 0 : i32
    %c0_i32_0 = arith.constant 0 : i32
    return %arg0, %c0_i32 : i32, i32
  }
  func.func @transform_1(%arg0: i32) -> (i32, i32) {
    %c0_i32 = arith.constant 0 : i32
    %c0_i32_0 = arith.constant 0 : i32
    %c0_i32_1 = arith.constant 0 : i32
    return %c0_i32, %c0_i32_0 : i32, i32
  }
  func.func @transform_2(%arg0: i32) -> (i32, i32) {
    %c0_i32 = arith.constant 0 : i32
    %c0_i32_0 = arith.constant 0 : i32
    %c0_i32_1 = arith.constant 0 : i32
    return %c0_i32, %c0_i32_0 : i32, i32
  }
  func.func @transform_3(%arg0: i32) -> (i32, i32) {
    %c0_i32 = arith.constant 0 : i32
    %c0_i32_0 = arith.constant 0 : i32
    %c0_i32_1 = arith.constant 0 : i32
    return %c0_i32, %c0_i32_0 : i32, i32
  }
  func.func @transform_4(%arg0: i32) -> (i32, i32) {
    %c0_i32 = arith.constant 0 : i32
    %c0_i32_0 = arith.constant 0 : i32
    %c0_i32_1 = arith.constant 0 : i32
    return %c0_i32, %c0_i32_0 : i32, i32
  }
  func.func @transform_5(%arg0: i32) -> (i32, i32) {
    %c0_i32 = arith.constant 0 : i32
    %c0_i32_0 = arith.constant 0 : i32
    %c0_i32_1 = arith.constant 0 : i32
    return %c0_i32, %c0_i32_0 : i32, i32
  }
  func.func @transform_6(%arg0: i32) -> (i32, i32) {
    %c0_i32 = arith.constant 0 : i32
    %c0_i32_0 = arith.constant 0 : i32
    return %arg0, %c0_i32 : i32, i32
  }
}

</mosaic_0001>

<bundles_post_ra>
// kernel: tpu_custom_call.1
= control target key start
LH: loop header
LB: loop body
LE: loop exit
PB: predicated region body
PF: predicated region fallthrough
CT: control target
= control target key end

     0   :  { %11 = vsyncpa [#allocation3], 0  ;;  %s1232_s0 = inlined_call_operand.hbm [shape: bf16[16,16], index: 0, kind: input, shape index: {}]   ;;  %s1233_s1 = inlined_call_operand.hbm [shape: f32[16,128], index: 1, kind: input, shape index: {}]   ;;  %s1234_s2 = inlined_call_operand.hbm [shape: bf16[128,384], index: 2, kind: input, shape index: {}]   ;;  %s1235_s3 = inlined_call_operand.hbm [shape: bf16[128,384], index: 3, kind: input, shape index: {}]   ;;  %s1236_s4 = inlined_call_operand.vmem [shape: f32[1,384], index: 4, kind: input, shape index: {}]   ;;  %s1237_s5 = inlined_call_operand.vmem [shape: f32[1,384], index: 5, kind: input, shape index: {}]   ;;  %s1238_s6 = inlined_call_operand.hbm [shape: f32[16,128], index: 6, kind: output, shape index: {}]  }
   0x1   :  { %12 = vsyncpa [#allocation6], 0 }
   0x2   :  { %13 = vsyncpa [#allocation9], 0 }
   0x3   :  { %14 = vsyncpa [#allocation4], 0  ;;  %s1075_s21 = smov [#allocation5]   ;;  %s957_s25 = scalar_lea.hbm %s1233_s1, 256 }
   0x4   :  { %s32_s22 = sshll.u32 %s1075_s21, 4  ;;  %p958_p0 = scmp.ne.s32.totalorder %s1233_s1, %s957_s25  ;;  %s33_s22 = int_to_ptr.vmem [resolvable:$true] %s32_s22 }
   0x5   :  { %p961_p1 = scmp.lt.u32.totalorder %s957_s25, %s1233_s1 }
   0x7   :  { %p963_p2 = pnand %p961_p1, %p958_p0 }
   0x9   :  { %966 = shalt.err (!%p963_p2)
}
   0xa   :  { %s967_s30 = scalar_lea.vmem %s33_s22, 256  ;;  %p972_p4 = scmp.lt.s32.totalorder %s33_s22, %s33_s22 }
   0xb   :  { %p968_p3 = scmp.ne.s32.totalorder %s33_s22, %s967_s30  ;;  %p973_p5 = scmp.lt.s32.totalorder %s967_s30, %s967_s30 }
   0xd   :  { %p974_p6 = por %p973_p5, %p972_p4 }
   0xf   :  { %p975_p7 = pnand %p974_p6, %p968_p3 }
  0x11   :  { %978 = shalt.err (!%p975_p7)
}
  0x12   :  { %s1076_s7 = smov 128   ;;  %s1077_s8 = smov 8  }
  0x13   :  { %38 = dma.hbm_to_vmem [thread:$0]  %s1233_s1, 256, %s33_s22, [#allocation6], %s1076_s7, %s1076_s7, %s1077_s8  }
  0x14   :  { %s1078_s11 = smov [#allocation2]   ;;  %s979_s15 = scalar_lea.hbm %s1232_s0, 128 }
  0x15   :  { %s20_s12 = sshll.u32 %s1078_s11, 4  ;;  %p980_p8 = scmp.ne.s32.totalorder %s1232_s0, %s979_s15  ;;  %s21_s12 = int_to_ptr.vmem [resolvable:$true] %s20_s12 }
  0x16   :  { %p983_p9 = scmp.lt.u32.totalorder %s979_s15, %s1232_s0 }
  0x18   :  { %p985_p10 = pnand %p983_p9, %p980_p8 }
  0x1a   :  { %988 = shalt.err (!%p985_p10)
}
  0x1b   :  { %s989_s20 = scalar_lea.vmem %s21_s12, 128  ;;  %p994_p12 = scmp.lt.s32.totalorder %s21_s12, %s21_s12 }
  0x1c   :  { %p990_p11 = scmp.ne.s32.totalorder %s21_s12, %s989_s20  ;;  %p995_p13 = scmp.lt.s32.totalorder %s989_s20, %s989_s20 }
  0x1e   :  { %p996_p0 = por %p995_p13, %p994_p12 }
  0x20   :  { %p997_p1 = pnand %p996_p0, %p990_p11 }
  0x22   :  { %1000 = shalt.err (!%p997_p1)
}
  0x23   :  { %s1079_s1 = smov 64   ;;  %s1080_s21 = smov 4  }
  0x24   :  { %26 = dma.hbm_to_vmem [thread:$0]  %s1232_s0, 128, %s21_s12, [#allocation3], %s1079_s1, %s1079_s1, %s1080_s21  }
  0x25   :  { %s1081_s24 = smov [#allocation7]   ;;  %s1001_s28 = scalar_lea.hbm %s1234_s2, 3072 }
  0x26   :  { %s44_s25 = sshll.u32 %s1081_s24, 4  ;;  %p1002_p2 = scmp.ne.s32.totalorder %s1234_s2, %s1001_s28  ;;  %s45_s25 = int_to_ptr.vmem [resolvable:$true] %s44_s25 }
  0x27   :  { %p1005_p3 = scmp.lt.u32.totalorder %s1001_s28, %s1234_s2 }
  0x29   :  { %p1007_p4 = pnand %p1005_p3, %p1002_p2 }
  0x2b   :  { %1010 = shalt.err (!%p1007_p4)
}
  0x2c   :  { %s1011_s11 = scalar_lea.vmem %s45_s25, 3072  ;;  %p1016_p6 = scmp.lt.s32.totalorder %s45_s25, %s45_s25 }
  0x2d   :  { %p1012_p5 = scmp.ne.s32.totalorder %s45_s25, %s1011_s11  ;;  %p1017_p7 = scmp.lt.s32.totalorder %s1011_s11, %s1011_s11 }
  0x2f   :  { %p1018_p8 = por %p1017_p7, %p1016_p6 }
  0x31   :  { %p1019_p9 = pnand %p1018_p8, %p1012_p5 }
  0x33   :  { %1022 = shalt.err (!%p1019_p9)
}
  0x34   :  { %s1082_s0 = smov 192   ;;  %s1083_s12 = smov 12  }
  0x35   :  { %50 = dma.hbm_to_vmem [thread:$0]  %s1234_s2, 3072, %s45_s25, [#allocation6], %s1082_s0, %s1082_s0, %s1083_s12  }
  0x36   :  { %s1084_s15 = smov [#allocation8]   ;;  %s1023_s19 = scalar_lea.hbm %s1235_s3, 3072 }
  0x37   :  { %s56_s16 = sshll.u32 %s1084_s15, 4  ;;  %p1024_p10 = scmp.ne.s32.totalorder %s1235_s3, %s1023_s19  ;;  %s57_s16 = int_to_ptr.vmem [resolvable:$true] %s56_s16 }
  0x38   :  { %p1027_p11 = scmp.lt.u32.totalorder %s1023_s19, %s1235_s3 }
  0x3a   :  { %p1029_p12 = pnand %p1027_p11, %p1024_p10 }
  0x3c   :  { %1032 = shalt.err (!%p1029_p12)
}
  0x3d   :  { %s1033_s23 = scalar_lea.vmem %s57_s16, 3072  ;;  %p1038_p0 = scmp.lt.s32.totalorder %s57_s16, %s57_s16 }
  0x3e   :  { %p1034_p13 = scmp.ne.s32.totalorder %s57_s16, %s1033_s23  ;;  %p1039_p1 = scmp.lt.s32.totalorder %s1033_s23, %s1033_s23 }
  0x40   :  { %p1040_p2 = por %p1039_p1, %p1038_p0 }
  0x42   :  { %p1041_p3 = pnand %p1040_p2, %p1034_p13 }
  0x44   :  { %1044 = shalt.err (!%p1041_p3)
}
  0x45   :  { %62 = dma.hbm_to_vmem [thread:$0]  %s1235_s3, 3072, %s57_s16, [#allocation9], %s1082_s0, %s1082_s0, %s1083_s12  }
  0x46   :  { %1067 = dma.done.wait [#allocation3], 128  }
  0x47   :  { %1068 = vsyncadd [#allocation3], 4294967168 }
  0x48   :  { %1069 = dma.done.wait [#allocation6], 3328  }
  0x49   :  { %1070 = vsyncadd [#allocation6], 4294963968 }
  0x4a   :  { %1071 = dma.done.wait [#allocation9], 3072  }
  0x4b   :  { %1072 = vsyncadd [#allocation9], 4294964224  ;;  %v1085_v0 = vmov 0.0   ;;  %vm1086_vm0 = vmmov 0   ;;  %v1178_v1 = vld [vmem:[#allocation5] sm:$0xff]  ;;  %v1180_v2 = vld [vmem:[#allocation5 + $0x8] sm:$0xff]  ;;  %v174_v63 = vlaneseq }
  0x4c   :  { %800 = vmatprep.subr.bf16.mxu0 %v1085_v0  ;;  %802 = vmatprep.mubr.msk.bf16.mxu0 %vm1086_vm0, %v1085_v0  ;;  %v1184_v3 = vpack.c.bf16 %v1180_v2, %v1178_v1  ;;  %v872_v4 = vld [vmem:[#allocation2] sm:$0xff]   ;;  %vm94_vm1 = vcmask 130048   ;;  %v873_v5 = vld [vmem:[#allocation7 + $0x4] ss:$12 sps:$4 sm:$0xff]   ;;  %v881_v11 = vld [vmem:[#allocation7 + $0x34] ss:$12 sps:$4 sm:$0xff]  }
  0x4d   :  { %v875_v6 = vld [vmem:[#allocation7] ss:$12 sps:$4 sm:$0xff]   ;;  %v876_v7 = vld [vmem:[#allocation7 + $0x8] ss:$12 sps:$4 sm:$0xff]   ;;  %317 = vmatprep.subr.bf16.mxu1 %v873_v5  ;;  %v879_v9 = vld [vmem:[#allocation7 + $0x18] ss:$12 sps:$4 sm:$0xff]  }
  0x4e   :  { %801 = vmatpush3.bf16.msra.mxu0 %v1184_v3  ;;  %v877_v8 = vld [vmem:[#allocation7 + $0x1c] ss:$12 sps:$4 sm:$0xff]   ;;  %318 = vmatpush1.bf16.msra.mxu1 %v875_v6  ;;  %v880_v10 = vld [vmem:[#allocation7 + $0x20] ss:$12 sps:$4 sm:$0xff]   ;;  %v884_v14 = vld [vmem:[#allocation7 + $0x38] ss:$12 sps:$4 sm:$0xff]  }
  0x4f   :  { %806 = vmatprep.subr.bf16.mxu0 %v1085_v0  ;;  %319 = vmatprep.subr.bf16.mxu1 %v877_v8  ;;  %v883_v12 = vld [vmem:[#allocation7 + $0x30] ss:$12 sps:$4 sm:$0xff]   ;;  %v885_v13 = vld [vmem:[#allocation7 + $0x4c] ss:$12 sps:$4 sm:$0xff]   ;;  %v887_v15 = vld [vmem:[#allocation7 + $0x48] ss:$12 sps:$4 sm:$0xff]  }
  0x50   :  { %v889_v16 = vld [vmem:[#allocation7 + $0x64] ss:$12 sps:$4 sm:$0xff]   ;;  %v891_v18 = vld [vmem:[#allocation7 + $0x60] ss:$12 sps:$4 sm:$0xff]   ;;  %v892_v19 = vld [vmem:[#allocation7 + $0x68] ss:$12 sps:$4 sm:$0xff]  }
  0x51   :  { %803 = vmatmul.mubr.msk.bf16.vlgmr.msra.gmra.mrb[0].mxu0 %vm94_vm1, %v872_v4  ;;  %v888_v17 = vld [vmem:[#allocation7 + $0x50] ss:$12 sps:$4 sm:$0xff]   ;;  %v895_v21 = vld [vmem:[#allocation7 + $0x78] ss:$12 sps:$4 sm:$0xff]   ;;  %v897_v22 = vld [vmem:[#allocation7 + $0x94] ss:$12 sps:$4 sm:$0xff]  }
  0x52   :  { %807 = vmatpush3.bf16.msra.mxu0 %v876_v7  ;;  %822 = vmatprep.mubr.msk.bf16.mxu0 %vm1086_vm0, %v1085_v0  ;;  %v893_v20 = vld [vmem:[#allocation7 + $0x7c] ss:$12 sps:$4 sm:$0xff]   ;;  %v896_v23 = vld [vmem:[#allocation7 + $0x80] ss:$12 sps:$4 sm:$0xff]   ;;  %v900_v25 = vld [vmem:[#allocation7 + $0x98] ss:$12 sps:$4 sm:$0xff]  }
  0x53   :  { %808 = vmatprep.subr.bf16.mxu0 %v1085_v0  ;;  %320 = vmatpush1.bf16.msra.mxu1 %v879_v9  ;;  %v899_v24 = vld [vmem:[#allocation7 + $0x90] ss:$12 sps:$4 sm:$0xff]   ;;  %v901_v26 = vld [vmem:[#allocation7 + $0xac] ss:$12 sps:$4 sm:$0xff]   ;;  %v903_v27 = vld [vmem:[#allocation7 + $0xa8] ss:$12 sps:$4 sm:$0xff]  }
  0x54   :  { %321 = vmatprep.subr.bf16.mxu1 %v881_v11  ;;  %v904_v28 = vld [vmem:[#allocation7 + $0xb0] ss:$12 sps:$4 sm:$0xff]   ;;  %v1087_v30 = vmov 0   ;;  %v905_v34 = vld [vmem:[#allocation8] ss:$12 sps:$4 sm:$0xff]   ;;  %v175_v4 = vshrl.u32 %v174_v63, 7 }
  0x55   :  { %v907_v29 = vld [vmem:[#allocation8 + $0x4] ss:$12 sps:$4 sm:$0xff]   ;;  %349 = vmatprep.mubr.bf16.mxu1 %v1087_v30  ;;  %v926_v35 = vld [vmem:[#allocation8 + $0x8] ss:$12 sps:$4 sm:$0xff]   ;;  %v930_v40 = vld [vmem:[#allocation8 + $0x20] ss:$12 sps:$4 sm:$0xff]  }
  0x56   :  { %809 = vmatpush3.bf16.msra.mxu0 %v880_v10  ;;  %v910_v38 = vld [vmem:[#allocation8 + $0x1c] ss:$12 sps:$4 sm:$0xff]   ;;  %v908_v39 = vld [vmem:[#allocation8 + $0x18] ss:$12 sps:$4 sm:$0xff]   ;;  %v913_v41 = vld [vmem:[#allocation8 + $0x34] ss:$12 sps:$4 sm:$0xff]  }
  0x57   :  { %810 = vmatprep.subr.bf16.mxu0 %v1085_v0  ;;  %322 = vmatpush1.bf16.msra.mxu1 %v883_v12  ;;  %v911_v42 = vld [vmem:[#allocation8 + $0x30] ss:$12 sps:$4 sm:$0xff]   ;;  %v931_v43 = vld [vmem:[#allocation8 + $0x38] ss:$12 sps:$4 sm:$0xff]   ;;  %v914_v45 = vld [vmem:[#allocation8 + $0x48] ss:$12 sps:$4 sm:$0xff]  }
  0x58   :  { %323 = vmatprep.subr.bf16.mxu1 %v885_v13  ;;  %v916_v44 = vld [vmem:[#allocation8 + $0x4c] ss:$12 sps:$4 sm:$0xff]   ;;  %v932_v46 = vld [vmem:[#allocation8 + $0x50] ss:$12 sps:$4 sm:$0xff]   ;;  %v933_v49 = vld [vmem:[#allocation8 + $0x68] ss:$12 sps:$4 sm:$0xff]  }
  0x59   :  { %v919_v47 = vld [vmem:[#allocation8 + $0x64] ss:$12 sps:$4 sm:$0xff]   ;;  %v917_v48 = vld [vmem:[#allocation8 + $0x60] ss:$12 sps:$4 sm:$0xff]   ;;  %v922_v50 = vld [vmem:[#allocation8 + $0x7c] ss:$12 sps:$4 sm:$0xff]  }
  0x5a   :  { %811 = vmatpush3.bf16.msra.mxu0 %v884_v14  ;;  %v920_v51 = vld [vmem:[#allocation8 + $0x78] ss:$12 sps:$4 sm:$0xff]   ;;  %v934_v52 = vld [vmem:[#allocation8 + $0x80] ss:$12 sps:$4 sm:$0xff]   ;;  %v923_v54 = vld [vmem:[#allocation8 + $0x90] ss:$12 sps:$4 sm:$0xff]  }
  0x5b   :  { %812 = vmatprep.subr.bf16.mxu0 %v1085_v0  ;;  %324 = vmatpush1.bf16.msra.mxu1 %v887_v15  ;;  %v925_v53 = vld [vmem:[#allocation8 + $0x94] ss:$12 sps:$4 sm:$0xff]   ;;  %v935_v55 = vld [vmem:[#allocation8 + $0x98] ss:$12 sps:$4 sm:$0xff]   ;;  %v936_v58 = vld [vmem:[#allocation8 + $0xb0] ss:$12 sps:$4 sm:$0xff]  }
  0x5c   :  { %325 = vmatprep.subr.bf16.mxu1 %v889_v16  ;;  %v929_v56 = vld [vmem:[#allocation8 + $0xac] ss:$12 sps:$4 sm:$0xff]   ;;  %v927_v57 = vld [vmem:[#allocation8 + $0xa8] ss:$12 sps:$4 sm:$0xff]   ;;  %v176_v5 = vsub.s32 0, %v175_v4  ;;  %v180_v7 = vsub.s32 1, %v175_v4 }
  0x5d   :  { %v434_v6 = vld [vmem:[%s1237_s5] sm:$0x7] }
  0x5e   :  { %813 = vmatpush3.bf16.msra.mxu0 %v888_v17  ;;  %v439_v9 = vrot.slane %v434_v6, %v176_v5 }
  0x5f   :  { %814 = vmatprep.subr.bf16.mxu0 %v1085_v0  ;;  %326 = vmatpush1.bf16.msra.mxu1 %v891_v18 }
  0x60   :  { %327 = vmatprep.subr.bf16.mxu1 %v893_v20 }
  0x62   :  { %815 = vmatpush3.bf16.msra.mxu0 %v892_v19 }
  0x63   :  { %816 = vmatprep.subr.bf16.mxu0 %v1085_v0  ;;  %328 = vmatpush1.bf16.msra.mxu1 %v895_v21 }
  0x64   :  { %329 = vmatprep.subr.bf16.mxu1 %v897_v22 }
  0x66   :  { %817 = vmatpush3.bf16.msra.mxu0 %v896_v23 }
  0x67   :  { %818 = vmatprep.subr.bf16.mxu0 %v1085_v0  ;;  %330 = vmatpush1.bf16.msra.mxu1 %v899_v24 }
  0x68   :  { %331 = vmatprep.subr.bf16.mxu1 %v901_v26 }
  0x6a   :  { %819 = vmatpush3.bf16.msra.mxu0 %v900_v25 }
  0x6b   :  { %820 = vmatprep.subr.bf16.mxu0 %v1085_v0  ;;  %332 = vmatpush1.bf16.msra.mxu1 %v903_v27 }
  0x6c   :  { %579 = vmatprep.subr.bf16.mxu1 %v907_v29 }
  0x6e   :  { %821 = vmatpush3.bf16.msra.mxu0 %v904_v28 }
  0x6f   :  { %826 = vmatprep.subr.bf16.mxu0 %v1085_v0 }
 0x124   :  { %v132_v31 = vpop.f32.mrb[0].mxu0 }
 0x125   :  { %v804_v32 = vpop.f32.mrb[1].mxu0 }
 0x126   :  { %v135_v33 = vpop.f32.mrb[2].mxu0 }
 0x127   :  { %v139_v36 = vpack.c.bf16 %v135_v33, %v132_v31  ;;  %v805_v37 = vpop.f32.mrb[3].mxu0  ;;  %v184_v33 = vsub.s32 2, %v175_v4 }
 0x129   :  { %350 = vmatmul.mubr.bf16.vlgmr.msra.gmra.mrb[0].mxu1 %v139_v36  ;;  %823 = vmatmul.mubr.bf16.vlgmr.msra.gmra.mrb[4].mxu0 %v139_v36 }
 0x12a   :  { %580 = vmatpush1.bf16.msra.mxu1 %v905_v34  ;;  %827 = vmatpush3.bf16.msra.mxu0 %v926_v35  ;;  %v447_v34 = vrot.slane %v434_v6, %v184_v33 }
 0x12b   :  { %581 = vmatprep.subr.bf16.mxu1 %v910_v38  ;;  %828 = vmatprep.subr.bf16.mxu0 %v1085_v0 }
 0x12c   :  { %611 = vmatprep.mubr.bf16.mxu1 %v1087_v30  ;;  %842 = vmatprep.mubr.msk.bf16.mxu0 %vm1086_vm0, %v1085_v0 }
 0x12e   :  { %582 = vmatpush1.bf16.msra.mxu1 %v908_v39  ;;  %829 = vmatpush3.bf16.msra.mxu0 %v930_v40 }
 0x12f   :  { %583 = vmatprep.subr.bf16.mxu1 %v913_v41  ;;  %830 = vmatprep.subr.bf16.mxu0 %v1085_v0 }
 0x132   :  { %584 = vmatpush1.bf16.msra.mxu1 %v911_v42  ;;  %831 = vmatpush3.bf16.msra.mxu0 %v931_v43 }
 0x133   :  { %585 = vmatprep.subr.bf16.mxu1 %v916_v44  ;;  %832 = vmatprep.subr.bf16.mxu0 %v1085_v0 }
 0x136   :  { %586 = vmatpush1.bf16.msra.mxu1 %v914_v45  ;;  %833 = vmatpush3.bf16.msra.mxu0 %v932_v46 }
 0x137   :  { %587 = vmatprep.subr.bf16.mxu1 %v919_v47  ;;  %834 = vmatprep.subr.bf16.mxu0 %v1085_v0 }
 0x13a   :  { %588 = vmatpush1.bf16.msra.mxu1 %v917_v48  ;;  %835 = vmatpush3.bf16.msra.mxu0 %v933_v49 }
 0x13b   :  { %589 = vmatprep.subr.bf16.mxu1 %v922_v50  ;;  %836 = vmatprep.subr.bf16.mxu0 %v1085_v0 }
 0x13e   :  { %590 = vmatpush1.bf16.msra.mxu1 %v920_v51  ;;  %837 = vmatpush3.bf16.msra.mxu0 %v934_v52 }
 0x13f   :  { %591 = vmatprep.subr.bf16.mxu1 %v925_v53  ;;  %838 = vmatprep.subr.bf16.mxu0 %v1085_v0 }
 0x142   :  { %592 = vmatpush1.bf16.msra.mxu1 %v923_v54  ;;  %839 = vmatpush3.bf16.msra.mxu0 %v935_v55 }
 0x143   :  { %593 = vmatprep.subr.bf16.mxu1 %v929_v56  ;;  %840 = vmatprep.subr.bf16.mxu0 %v1085_v0  ;;  %v172_v0 = vld [vmem:[%s1236_s4] sm:$0x7]  ;;  %s1088_s4 = smov [#allocation10]  }
 0x144   :  { %v177_v8 = vrot.slane %v172_v0, %v176_v5  ;;  %v181_v10 = vrot.slane %v172_v0, %v180_v7  ;;  %v185_v37 = vrot.slane %v172_v0, %v184_v33  ;;  %s712_s5 = sshll.u32 %s1088_s4, 4  ;;  %s713_s5 = int_to_ptr.vmem [resolvable:$true] %s712_s5 }
 0x145   :  { %s1045_s28 = scalar_lea.vmem %s713_s5, 256  ;;  %p1050_p5 = scmp.lt.s32.totalorder %s713_s5, %s713_s5 }
 0x146   :  { %594 = vmatpush1.bf16.msra.mxu1 %v927_v57  ;;  %841 = vmatpush3.bf16.msra.mxu0 %v936_v58  ;;  %v846_v11 = vadd.f32 %v439_v9, %v177_v8  ;;  %p1046_p4 = scmp.ne.s32.totalorder %s713_s5, %s1045_s28  ;;  %p1051_p6 = scmp.lt.s32.totalorder %s1045_s28, %s1045_s28 }
 0x148   :  { %p1052_p7 = por %p1051_p6, %p1050_p5 }
 0x149   :  { %612 = vmatmul.mubr.bf16.vlgmr.msra.gmra.mrb[0].mxu1 %v1184_v3  ;;  %843 = vmatmul.mubr.bf16.vlgmr.msra.gmra.mrb[8].mxu0 %v1184_v3  ;;  %v443_v3 = vrot.slane %v434_v6, %v180_v7 }
 0x14a   :  { %p1053_p8 = pnand %p1052_p7, %p1046_p4 }
 0x14b   :  { %v848_v13 = vadd.f32 %v443_v3, %v181_v10 }
 0x1fc   :  { %v394_v59 = vpop.f32.mrb[4].mxu0 }
 0x1fd   :  { %v824_v60 = vpop.f32.mrb[5].mxu0  ;;  %v395_v42 = vadd.f32 %v394_v59, %v185_v37 }
 0x1fe   :  { %v397_v61 = vpop.f32.mrb[6].mxu0 }
 0x1ff   :  { %v825_v62 = vpop.f32.mrb[7].mxu0  ;;  %v398_v46 = vadd.f32 %v397_v61, %v185_v37 }
 0x21c   :  { %v613_v12 = vpop.f32.mrb[0].mxu1  ;;  %v656_v14 = vpop.f32.mrb[8].mxu0 }
 0x21d   :  { %v847_v15 = vadd.f32 %v846_v11, %v613_v12  ;;  %v615_v16 = vpop.f32.mrb[1].mxu1  ;;  %v844_v17 = vpop.f32.mrb[9].mxu0  ;;  %v657_v39 = vadd.f32 %v656_v14, %v447_v34 }
 0x21e   :  { %v617_v18 = vpop.f32.mrb[2].mxu1  ;;  %v659_v19 = vpop.f32.mrb[10].mxu0  ;;  %v849_v24 = vadd.f32 %v848_v13, %v615_v16 }
 0x21f   :  { %v776_v20 = vmul.f32 -1.442695, %v847_v15  ;;  %v851_v21 = vadd.f32 %v846_v11, %v617_v18  ;;  %v619_v22 = vpop.f32.mrb[3].mxu1  ;;  %v845_v23 = vpop.f32.mrb[11].mxu0  ;;  %v660_v44 = vadd.f32 %v659_v19, %v447_v34 }
 0x220   :  { %v853_v26 = vadd.f32 %v848_v13, %v619_v22  ;;  %v778_v27 = vmul.f32 -1.442695, %v849_v24 }
 0x221   :  { %937 = vpow2.f32 %v776_v20  ;;  %v777_v25 = vmul.f32 -1.442695, %v851_v21 }
 0x222   :  { %v779_v28 = vmul.f32 -1.442695, %v853_v26 }
 0x223   :  { %939 = vpow2.f32 %v777_v25 }
 0x224   :  { %941 = vpow2.f32 %v778_v27 }
 0x225   :  { %943 = vpow2.f32 %v779_v28 }
 0x22b   :  { %v938_v29 = vpop.eup %937 }
 0x22c   :  { %v671_v30 = vadd.f32 1.0, %v938_v29 }
 0x22d   :  { %v940_v31 = vpop.eup %939 }
 0x22e   :  { %945 = vrcp.f32 %v671_v30  ;;  %v672_v32 = vadd.f32 1.0, %v940_v31  ;;  %v942_v35 = vpop.eup %941 }
 0x22f   :  { %v944_v36 = vpop.eup %943  ;;  %v685_v38 = vadd.f32 1.0, %v942_v35 }
 0x230   :  { %947 = vrcp.f32 %v672_v32  ;;  %v686_v40 = vadd.f32 1.0, %v944_v36 }
 0x231   :  { %949 = vrcp.f32 %v685_v38 }
 0x232   :  { %951 = vrcp.f32 %v686_v40 }
 0x238   :  { %v946_v41 = vpop.eup %945 }
 0x239   :  { %v691_v43 = vmul.f32 %v946_v41, %v657_v39 }
 0x23a   :  { %v948_v45 = vpop.eup %947 }
 0x23b   :  { %v693_v47 = vadd.f32 %v691_v43, %v395_v42  ;;  %v692_v48 = vmul.f32 %v948_v45, %v660_v44  ;;  %v950_v50 = vpop.eup %949 }
 0x23c   :  { %v952_v51 = vpop.eup %951  ;;  %v697_v52 = vsub.f32 1.0, %v950_v50  ;;  %v701_v56 = vmul.f32 %v950_v50, %v1178_v1 }
 0x23d   :  { %953 = vtanh.f32 %v693_v47  ;;  %v694_v49 = vadd.f32 %v692_v48, %v398_v46  ;;  %v698_v54 = vsub.f32 1.0, %v952_v51  ;;  %v702_v59 = vmul.f32 %v952_v51, %v1180_v2 }
 0x23f   :  { %955 = vtanh.f32 %v694_v49 }
 0x247   :  { %v954_v53 = vpop.eup %953 }
 0x248   :  { %v699_v55 = vmul.f32 %v954_v53, %v697_v52 }
 0x249   :  { %v956_v57 = vpop.eup %955 }
 0x24a   :  { %v700_v58 = vmul.f32 %v956_v57, %v698_v54  ;;  %v703_v60 = vadd.f32 %v701_v56, %v699_v55 }
 0x24c   :  { %v704_v61 = vadd.f32 %v702_v59, %v700_v58  ;;  %705 = vst [vmem:[#allocation10] sm:$0xff] %v703_v60 }
 0x24e   :  { %706 = vst [vmem:[#allocation10 + $0x8] sm:$0xff] %v704_v61 }
 0x24f   :  { %1056 = shalt.err (!%p1053_p8)
}
 0x250   :  { %s1057_s9 = scalar_lea.hbm %s1238_s6, 256 }
 0x251   :  { %p1058_p9 = scmp.ne.s32.totalorder %s1238_s6, %s1057_s9  ;;  %p1061_p10 = scmp.lt.u32.totalorder %s1057_s9, %s1238_s6 }
 0x253   :  { %p1063_p11 = pnand %p1061_p10, %p1058_p9 }
 0x255   :  { %1066 = shalt.err (!%p1063_p11)
}
 0x256   :  { %718 = dma.vmem_to_hbm [thread:$0]  %s713_s5, 256, %s1238_s6, [#allocation4], %s1076_s7, %s1076_s7, %s1077_s8  }
 0x257   :  { %1073 = dma.done.wait [#allocation4], 256  }
 0x258   :  { %1074 = vsyncadd [#allocation4], 4294967040 }
 0x259   :  { %722 = vsyncpa [#allocation3], 1 }
 0x25a   :  { %723 = vsyncpa [#allocation6], 1 }
 0x25b   :  { %724 = vsyncpa [#allocation9], 1 }
 0x25c   :  { %725 = vsyncpa [#allocation4], 1 }

</bundles_post_ra>
